<compile_context>
chip_gen: v7x
topology: tpu7x:2x2x1
jax: 0.10.0
libtpu: 0.0.40
codegen_flags: <defaults>
</compile_context>

<pallas_src>
import math

import jax
import jax.numpy as jnp
from jax.experimental import pallas as pl
from jax.experimental.pallas import tpu as pltpu

LN_EPS = 1e-5


# ----------------------------- kernel helpers ------------------------------

def _layernorm(x, gamma, beta):
    # x: (T, D) f32, gamma/beta: (1, D) f32
    mu = jnp.mean(x, axis=-1, keepdims=True)
    var = jnp.mean((x - mu) ** 2, axis=-1, keepdims=True)
    return (x - mu) * jax.lax.rsqrt(var + LN_EPS) * gamma + beta


def _gelu_exact(x):
    # matches torch.nn.GELU() default (exact erf form)
    return 0.5 * x * (1.0 + jax.lax.erf(x * (1.0 / math.sqrt(2.0))))


# ----------------------- fused attention-stack kernel -----------------------

def _make_attn_stack_kernel(compute_dtype):
    approx = compute_dtype != jnp.float32

    def kernel(x_ref, g_ref, b_ref, wq_ref, wk_ref, wvo_ref, o_ref, acc_ref):
        layer = pl.program_id(1)

        @pl.when(layer == 0)
        def _():
            acc_ref[...] = x_ref[0].astype(jnp.float32)

        x = acc_ref[...]                                          # (T, D) f32 residual
        xn = _layernorm(x, g_ref[0].astype(jnp.float32),
                        b_ref[0].astype(jnp.float32))             # (T, D)
        xn_c = xn.astype(compute_dtype)

        # wq already carries the 1/sqrt(rank) scale (folded in the wrapper).
        q = jnp.dot(xn_c, wq_ref[0], preferred_element_type=jnp.float32)    # (T, R)
        k = jnp.dot(xn_c, wk_ref[0], preferred_element_type=jnp.float32)    # (T, R)
        # v' = xn @ (wv @ wo): V and output projections folded into one weight.
        vp = jnp.dot(xn_c, wvo_ref[0], preferred_element_type=jnp.float32)  # (T, D)

        # scores: contract the rank dim directly (no k.T XLU transpose)
        s = jax.lax.dot_general(
            q.astype(compute_dtype), k.astype(compute_dtype),
            dimension_numbers=(((1,), (1,)), ((), ())),
            preferred_element_type=jnp.float32)                   # (T, T)

        m = jnp.max(s, axis=-1, keepdims=True)
        e = jnp.exp(s - m)
        denom = jnp.sum(e, axis=-1, keepdims=True)
        p = e * pl.reciprocal(denom, approx=approx)               # softmax, (T, T)

        y = jnp.dot(p.astype(compute_dtype), vp.astype(compute_dtype),
                    preferred_element_type=jnp.float32)           # (T, D)

        acc_ref[...] = x + y

        @pl.when(layer == pl.num_programs(1) - 1)
        def _():
            o_ref[0] = acc_ref[...].astype(o_ref.dtype)

    return kernel


def _attn_stack(x, ln_g, ln_b, wq, wk, wvo, *, compute_dtype):
    B, T, D = x.shape
    P, _, R = wq.shape
    kernel = _make_attn_stack_kernel(compute_dtype)
    return pl.pallas_call(
        kernel,
        out_shape=jax.ShapeDtypeStruct((B, T, D), x.dtype),
        grid_spec=pltpu.PrefetchScalarGridSpec(
            num_scalar_prefetch=0,
            grid=(B, P),                                   # layer axis innermost
            in_specs=[
                pl.BlockSpec((1, T, D), lambda b, p: (b, 0, 0)),   # x (read at p==0)
                pl.BlockSpec((1, 1, D), lambda b, p: (p, 0, 0)),   # ln gamma
                pl.BlockSpec((1, 1, D), lambda b, p: (p, 0, 0)),   # ln beta
                pl.BlockSpec((1, D, R), lambda b, p: (p, 0, 0)),   # wq (pre-scaled)
                pl.BlockSpec((1, D, R), lambda b, p: (p, 0, 0)),   # wk
                pl.BlockSpec((1, D, D), lambda b, p: (p, 0, 0)),   # wv @ wo folded
            ],
            out_specs=pl.BlockSpec((1, T, D), lambda b, p: (b, 0, 0)),
            scratch_shapes=[pltpu.VMEM((T, D), jnp.float32)],      # running residual
        ),
        compiler_params=pltpu.CompilerParams(
            dimension_semantics=("parallel", "arbitrary")),
    )(x, ln_g, ln_b, wq, wk, wvo)


# --------------------------------- MLP kernel --------------------------------

def _make_mlp_kernel(compute_dtype):
    def kernel(x_ref, g_ref, b_ref, w1_ref, w2_ref, o_ref):
        x = x_ref[...].astype(jnp.float32)                        # (tR, D)
        xn = _layernorm(x, g_ref[...].astype(jnp.float32),
                        b_ref[...].astype(jnp.float32))
        h = jnp.dot(xn.astype(compute_dtype), w1_ref[...],
                    preferred_element_type=jnp.float32)           # (tR, 4D)
        h = _gelu_exact(h)
        y = jnp.dot(h.astype(compute_dtype), w2_ref[...],
                    preferred_element_type=jnp.float32)           # (tR, D)
        o_ref[...] = (x + y).astype(o_ref.dtype)
    return kernel


def _mlp_layer(x, gamma, beta, w_fc, w_proj, *, compute_dtype, row_tile=256):
    B, T, D = x.shape
    H = w_fc.shape[1]
    rows = B * T
    x2 = x.reshape(rows, D)                       # LN/MLP are row-wise: flatten (B,T)
    tr = min(rows, row_tile)
    kernel = _make_mlp_kernel(compute_dtype)
    out = pl.pallas_call(
        kernel,
        out_shape=jax.ShapeDtypeStruct((rows, D), x.dtype),
        grid_spec=pltpu.PrefetchScalarGridSpec(
            num_scalar_prefetch=0,
            grid=(pl.cdiv(rows, tr),),
            in_specs=[
                pl.BlockSpec((tr, D), lambda i: (i, 0)),
                pl.BlockSpec((1, D), lambda i: (0, 0)),
                pl.BlockSpec((1, D), lambda i: (0, 0)),
                pl.BlockSpec((D, H), lambda i: (0, 0)),
                pl.BlockSpec((H, D), lambda i: (0, 0)),
            ],
            out_specs=pl.BlockSpec((tr, D), lambda i: (i, 0)),
        ),
        compiler_params=pltpu.CompilerParams(dimension_semantics=("parallel",)),
    )(x2, gamma, beta, w_fc, w_proj)
    return out.reshape(B, T, D)


# ------------------------------- block wrapper --------------------------------

def low_rank_attention_block(x, params, *, compute_dtype=jnp.float32):
    att = params["att"]
    D = x.shape[-1]
    R = att[0]["wq"].shape[-1]
    inv_sqrt_r = 1.0 / math.sqrt(R)

    # Stack per-layer params along a leading layer axis; fold wv@wo and the
    # 1/sqrt(rank) score scale into the weights (plain JAX, done once).
    ln_g = jnp.stack([p["ln_g"].reshape(1, D) for p in att])                 # (P,1,D)
    ln_b = jnp.stack([p["ln_b"].reshape(1, D) for p in att])                 # (P,1,D)
    wq = jnp.stack([p["wq"] * inv_sqrt_r for p in att]).astype(compute_dtype)  # (P,D,R)
    wk = jnp.stack([p["wk"] for p in att]).astype(compute_dtype)               # (P,D,R)
    wvo = jnp.stack([
        jnp.dot(p["wv"], p["wo"], preferred_element_type=jnp.float32)
        for p in att]).astype(compute_dtype)                                   # (P,D,D)

    # for i in range(attention_priority): x = x + att_i(att_norm_i(x))   [fused]
    x = _attn_stack(x, ln_g, ln_b, wq, wk, wvo, compute_dtype=compute_dtype)

    # x = x + mlp(mlp_norm(x))
    x = _mlp_layer(x, params["mlp_ln_g"], params["mlp_ln_b"],
                   params["w_fc"].astype(compute_dtype),
                   params["w_proj"].astype(compute_dtype),
                   compute_dtype=compute_dtype)
    return x


# ------------------------- pure-JAX reference (check) ------------------------

def _reference(x, params):
    def ln(x, g, b):
        mu = jnp.mean(x, axis=-1, keepdims=True)
        var = jnp.mean((x - mu) ** 2, axis=-1, keepdims=True)
        return (x - mu) / jnp.sqrt(var + LN_EPS) * g + b

    for p in params["att"]:
        xn = ln(x, p["ln_g"], p["ln_b"])
        q = xn @ p["wq"]
        k = xn @ p["wk"]
        v = xn @ p["wv"]
        s = jnp.einsum("btr,bsr->bts", q, k) / math.sqrt(q.shape[-1])
        a = jax.nn.softmax(s, axis=-1)
        y = jnp.einsum("bts,bsd->btd", a, v) @ p["wo"]
        x = x + y
    xn = ln(x, params["mlp_ln_g"], params["mlp_ln_b"])
    h = jax.nn.gelu(xn @ params["w_fc"], approximate=False)
    return x + h @ params["w_proj"]


# ---------------------------------- main -------------------------------------

def make_params(key, dim, rank, n_att):
    keys = jax.random.split(key, 4 * n_att + 2)
    att = []
    for i in range(n_att):
        kq, kk, kv, ko = keys[4 * i: 4 * i + 4]
        att.append(dict(
            ln_g=jnp.ones((1, dim), jnp.float32),
            ln_b=jnp.zeros((1, dim), jnp.float32),
            wq=(jax.random.normal(kq, (dim, rank), jnp.float32) / math.sqrt(dim)),
            wk=(jax.random.normal(kk, (dim, rank), jnp.float32) / math.sqrt(dim)),
            wv=(jax.random.normal(kv, (dim, dim), jnp.float32) / math.sqrt(dim)),
            wo=(jax.random.normal(ko, (dim, dim), jnp.float32) / math.sqrt(dim)),
        ))
    kfc, kpr = keys[-2:]
    return dict(
        att=att,
        mlp_ln_g=jnp.ones((1, dim), jnp.float32),
        mlp_ln_b=jnp.zeros((1, dim), jnp.float32),
        w_fc=(jax.random.normal(kfc, (dim, 4 * dim), jnp.float32) / math.sqrt(dim)),
        w_proj=(jax.random.normal(kpr, (4 * dim, dim), jnp.float32) / math.sqrt(4 * dim)),
    )


if __name__ == "__main__":
    # small config: dimension=32, rank=8, attention_priority=2, batch=2, seq=8
    B, T, D, R, P = 2, 8, 32, 8, 2

    root = jax.random.PRNGKey(0)
    kx, kp = jax.random.split(root)
    x = jax.random.normal(kx, (B, T, D), jnp.float32)
    params = make_params(kp, D, R, P)

    ref = _reference(x, params)

    # f32 MXU path: tight check against the pure-JAX reference.
    out_f32 = jax.block_until_ready(
        low_rank_attention_block(x, params, compute_dtype=jnp.float32))
    assert out_f32.shape == (B, T, D)
    err_f32 = float(jnp.max(jnp.abs(out_f32 - ref)))
    assert jnp.allclose(out_f32, ref, atol=2e-4, rtol=2e-4), f"f32 mismatch {err_f32}"

    # bf16 MXU path (the performance configuration): looser tolerance.
    out_bf16 = jax.block_until_ready(
        low_rank_attention_block(x, params, compute_dtype=jnp.bfloat16))
    err_bf16 = float(jnp.max(jnp.abs(out_bf16 - ref)))
    assert jnp.allclose(out_bf16, ref, atol=1e-1, rtol=1e-1), f"bf16 mismatch {err_bf16}"

    print("KERNEL_OK")
</pallas_src>

<mosaic_0001>
module attributes {stable_mosaic.version = 11 : i64} {
  func.func @kernel(%arg0: i32, %arg1: i32, %arg2: memref<1x8x32xf32, #tpu.memory_space<vmem>>, %arg3: memref<1x1x32xf32, #tpu.memory_space<vmem>>, %arg4: memref<1x1x32xf32, #tpu.memory_space<vmem>>, %arg5: memref<1x32x8xf32, #tpu.memory_space<vmem>>, %arg6: memref<1x32x8xf32, #tpu.memory_space<vmem>>, %arg7: memref<1x32x32xf32, #tpu.memory_space<vmem>>, %arg8: memref<1x8x32xf32, #tpu.memory_space<vmem>>, %arg9: memref<8x32xf32, #tpu.memory_space<vmem>>) attributes {dimension_semantics = [#tpu.dimension_semantics<parallel>, #tpu.dimension_semantics<arbitrary>], iteration_bounds = array<i64: 2, 2>, scalar_prefetch = 0 : i64, scratch_operands = 1 : i64, tpu.core_type = #tpu.core_type<tc>, window_params = [{transform_indices = @transform_0, window_bounds = array<i64: 1, 8, 32>}, {transform_indices = @transform_1, window_bounds = array<i64: 1, 1, 32>}, {transform_indices = @transform_2, window_bounds = array<i64: 1, 1, 32>}, {transform_indices = @transform_3, window_bounds = array<i64: 1, 32, 8>}, {transform_indices = @transform_4, window_bounds = array<i64: 1, 32, 8>}, {transform_indices = @transform_5, window_bounds = array<i64: 1, 32, 32>}, {transform_indices = @transform_6, window_bounds = array<i64: 1, 8, 32>}]} {
    %c0_i32 = arith.constant 0 : i32
    %0 = arith.cmpi eq, %arg1, %c0_i32 : i32
    %1 = arith.extui %0 : i1 to i32
    %c0_i32_0 = arith.constant 0 : i32
    %2 = arith.cmpi ne, %1, %c0_i32_0 : i32
    scf.if %2 {
      %c0_31 = arith.constant 0 : index
      %c0_32 = arith.constant 0 : index
      %c0_33 = arith.constant 0 : index
      %56 = vector.load %arg2[%c0_31, %c0_32, %c0_33] : memref<1x8x32xf32, #tpu.memory_space<vmem>>, vector<1x8x32xf32>
      %57 = vector.shape_cast %56 : vector<1x8x32xf32> to vector<8x32xf32>
      %c0_34 = arith.constant 0 : index
      %c0_35 = arith.constant 0 : index
      %58 = vector.load %arg9[%c0_34, %c0_35] : memref<8x32xf32, #tpu.memory_space<vmem>>, vector<8x32xf32>
      tpu.vector_store %arg9[%c0_34, %c0_35], %57 {strides = array<i32>} : memref<8x32xf32, #tpu.memory_space<vmem>>, vector<8x32xf32>,
    } else {
    }
    %c0 = arith.constant 0 : index
    %c0_1 = arith.constant 0 : index
    %3 = vector.load %arg9[%c0, %c0_1] : memref<8x32xf32, #tpu.memory_space<vmem>>, vector<8x32xf32>
    %c0_2 = arith.constant 0 : index
    %c0_3 = arith.constant 0 : index
    %c0_4 = arith.constant 0 : index
    %4 = vector.load %arg3[%c0_2, %c0_3, %c0_4] : memref<1x1x32xf32, #tpu.memory_space<vmem>>, vector<1x1x32xf32>
    %5 = vector.shape_cast %4 : vector<1x1x32xf32> to vector<1x32xf32>
    %c0_5 = arith.constant 0 : index
    %c0_6 = arith.constant 0 : index
    %c0_7 = arith.constant 0 : index
    %6 = vector.load %arg4[%c0_5, %c0_6, %c0_7] : memref<1x1x32xf32, #tpu.memory_space<vmem>>, vector<1x1x32xf32>
    %7 = vector.shape_cast %6 : vector<1x1x32xf32> to vector<1x32xf32>
    %cst = arith.constant dense<0.000000e+00> : vector<8xf32>
    %8 = vector.multi_reduction <add>, %3, %cst [1] : vector<8x32xf32> to vector<8xf32>
    %9 = vector.shape_cast %8 : vector<8xf32> to vector<8x1xf32>
    %cst_8 = arith.constant 3.200000e+01 : f32
    %10 = vector.broadcast %cst_8 : f32 to vector<8x1xf32>
    %11 = arith.divf %9, %10 : vector<8x1xf32>
    %12 = vector.broadcast %11 : vector<8x1xf32> to vector<8x32xf32>
    %13 = arith.subf %3, %12 : vector<8x32xf32>
    %14 = arith.mulf %13, %13 : vector<8x32xf32>
    %cst_9 = arith.constant dense<0.000000e+00> : vector<8xf32>
    %15 = vector.multi_reduction <add>, %14, %cst_9 [1] : vector<8x32xf32> to vector<8xf32>
    %16 = vector.shape_cast %15 : vector<8xf32> to vector<8x1xf32>
    %cst_10 = arith.constant 3.200000e+01 : f32
    %17 = vector.broadcast %cst_10 : f32 to vector<8x1xf32>
    %18 = arith.divf %16, %17 : vector<8x1xf32>
    %19 = vector.broadcast %11 : vector<8x1xf32> to vector<8x32xf32>
    %20 = arith.subf %3, %19 : vector<8x32xf32>
    %cst_11 = arith.constant 9.99999974E-6 : f32
    %21 = vector.broadcast %cst_11 : f32 to vector<8x1xf32>
    %22 = arith.addf %18, %21 : vector<8x1xf32>
    %23 = math.rsqrt %22 : vector<8x1xf32>
    %24 = vector.broadcast %23 : vector<8x1xf32> to vector<8x32xf32>
    %25 = arith.mulf %20, %24 : vector<8x32xf32>
    %26 = vector.broadcast %5 : vector<1x32xf32> to vector<8x32xf32>
    %27 = arith.mulf %25, %26 : vector<8x32xf32>
    %28 = vector.broadcast %7 : vector<1x32xf32> to vector<8x32xf32>
    %29 = arith.addf %27, %28 : vector<8x32xf32>
    %c0_12 = arith.constant 0 : index
    %c0_13 = arith.constant 0 : index
    %c0_14 = arith.constant 0 : index
    %30 = vector.load %arg5[%c0_12, %c0_13, %c0_14] : memref<1x32x8xf32, #tpu.memory_space<vmem>>, vector<1x32x8xf32>
    %31 = vector.shape_cast %30 : vector<1x32x8xf32> to vector<32x8xf32>
    %cst_15 = arith.constant dense<0.000000e+00> : vector<8x8xf32>
    %32 = tpu.matmul %29, %31, %cst_15 {dimension_numbers = #tpu.dot_dimension_numbers<[1], [0], [0], [1], [0, 0, 1, 1], [], []>} : vector<8x32xf32>, vector<32x8xf32>, vector<8x8xf32> -> vector<8x8xf32>
    %c0_16 = arith.constant 0 : index
    %c0_17 = arith.constant 0 : index
    %c0_18 = arith.constant 0 : index
    %33 = vector.load %arg6[%c0_16, %c0_17, %c0_18] : memref<1x32x8xf32, #tpu.memory_space<vmem>>, vector<1x32x8xf32>
    %34 = vector.shape_cast %33 : vector<1x32x8xf32> to vector<32x8xf32>
    %cst_19 = arith.constant dense<0.000000e+00> : vector<8x8xf32>
    %35 = tpu.matmul %29, %34, %cst_19 {dimension_numbers = #tpu.dot_dimension_numbers<[1], [0], [0], [1], [0, 0, 1, 1], [], []>} : vector<8x32xf32>, vector<32x8xf32>, vector<8x8xf32> -> vector<8x8xf32>
    %c0_20 = arith.constant 0 : index
    %c0_21 = arith.constant 0 : index
    %c0_22 = arith.constant 0 : index
    %36 = vector.load %arg7[%c0_20, %c0_21, %c0_22] : memref<1x32x32xf32, #tpu.memory_space<vmem>>, vector<1x32x32xf32>
    %37 = vector.shape_cast %36 : vector<1x32x32xf32> to vector<32x32xf32>
    %cst_23 = arith.constant dense<0.000000e+00> : vector<8x32xf32>
    %38 = tpu.matmul %29, %37, %cst_23 {dimension_numbers = #tpu.dot_dimension_numbers<[1], [0], [0], [1], [0, 0, 1, 1], [], []>} : vector<8x32xf32>, vector<32x32xf32>, vector<8x32xf32> -> vector<8x32xf32>
    %cst_24 = arith.constant dense<0.000000e+00> : vector<8x8xf32>
    %39 = tpu.matmul %32, %35, %cst_24 {dimension_numbers = #tpu.dot_dimension_numbers<[1], [1], [0], [0], [0, 0, 1, 0], [], []>} : vector<8x8xf32>, vector<8x8xf32>, vector<8x8xf32> -> vector<8x8xf32>
    %cst_25 = arith.constant dense<0xFF800000> : vector<8xf32>
    %40 = vector.multi_reduction <maximumf>, %39, %cst_25 [1] : vector<8x8xf32> to vector<8xf32>
    %41 = vector.shape_cast %40 : vector<8xf32> to vector<8x1xf32>
    %42 = vector.broadcast %41 : vector<8x1xf32> to vector<8x8xf32>
    %43 = arith.subf %39, %42 : vector<8x8xf32>
    %44 = math.exp %43 : vector<8x8xf32>
    %cst_26 = arith.constant dense<0.000000e+00> : vector<8xf32>
    %45 = vector.multi_reduction <add>, %44, %cst_26 [1] : vector<8x8xf32> to vector<8xf32>
    %46 = vector.shape_cast %45 : vector<8xf32> to vector<8x1xf32>
    %47 = tpu.reciprocal %46 : vector<8x1xf32> -> vector<8x1xf32>
    %48 = vector.broadcast %47 : vector<8x1xf32> to vector<8x8xf32>
    %49 = arith.mulf %44, %48 : vector<8x8xf32>
    %cst_27 = arith.constant dense<0.000000e+00> : vector<8x32xf32>
    %50 = tpu.matmul %49, %38, %cst_27 {dimension_numbers = #tpu.dot_dimension_numbers<[1], [0], [0], [1], [0, 0, 1, 1], [], []>} : vector<8x8xf32>, vector<8x32xf32>, vector<8x32xf32> -> vector<8x32xf32>
    %51 = arith.addf %3, %50 : vector<8x32xf32>
    %c0_28 = arith.constant 0 : index
    %c0_29 = arith.constant 0 : index
    %52 = vector.load %arg9[%c0_28, %c0_29] : memref<8x32xf32, #tpu.memory_space<vmem>>, vector<8x32xf32>
    tpu.vector_store %arg9[%c0_28, %c0_29], %51 {strides = array<i32>} : memref<8x32xf32, #tpu.memory_space<vmem>>, vector<8x32xf32>,
    %c1_i32 = arith.constant 1 : i32
    %53 = arith.cmpi eq, %arg1, %c1_i32 : i32
    %54 = arith.extui %53 : i1 to i32
    %c0_i32_30 = arith.constant 0 : i32
    %55 = arith.cmpi ne, %54, %c0_i32_30 : i32
    scf.if %55 {
      %c0_31 = arith.constant 0 : index
      %c0_32 = arith.constant 0 : index
      %56 = vector.load %arg9[%c0_31, %c0_32] : memref<8x32xf32, #tpu.memory_space<vmem>>, vector<8x32xf32>
      %c0_33 = arith.constant 0 : index
      %c0_34 = arith.constant 0 : index
      %c0_35 = arith.constant 0 : index
      %57 = vector.load %arg8[%c0_33, %c0_34, %c0_35] : memref<1x8x32xf32, #tpu.memory_space<vmem>>, vector<1x8x32xf32>
      %58 = vector.shape_cast %57 : vector<1x8x32xf32> to vector<8x32xf32>
      %59 = vector.shape_cast %56 : vector<8x32xf32> to vector<1x8x32xf32>
      tpu.vector_store %arg8[%c0_33, %c0_34, %c0_35], %59 {strides = array<i32>} : memref<1x8x32xf32, #tpu.memory_space<vmem>>, vector<1x8x32xf32>,
    } else {
    }
    return
  }
  func.func @transform_0(%arg0: i32, %arg1: i32) -> (i32, i32, i32) {
    %c0_i32 = arith.constant 0 : i32
    %c0_i32_0 = arith.constant 0 : i32
    %c0_i32_1 = arith.constant 0 : i32
    return %arg0, %c0_i32, %c0_i32_0 : i32, i32, i32
  }
  func.func @transform_1(%arg0: i32, %arg1: i32) -> (i32, i32, i32) {
    %c0_i32 = arith.constant 0 : i32
    %c0_i32_0 = arith.constant 0 : i32
    %c0_i32_1 = arith.constant 0 : i32
    return %arg1, %c0_i32, %c0_i32_0 : i32, i32, i32
  }
  func.func @transform_2(%arg0: i32, %arg1: i32) -> (i32, i32, i32) {
    %c0_i32 = arith.constant 0 : i32
    %c0_i32_0 = arith.constant 0 : i32
    %c0_i32_1 = arith.constant 0 : i32
    return %arg1, %c0_i32, %c0_i32_0 : i32, i32, i32
  }
  func.func @transform_3(%arg0: i32, %arg1: i32) -> (i32, i32, i32) {
    %c0_i32 = arith.constant 0 : i32
    %c0_i32_0 = arith.constant 0 : i32
    %c0_i32_1 = arith.constant 0 : i32
    return %arg1, %c0_i32, %c0_i32_0 : i32, i32, i32
  }
  func.func @transform_4(%arg0: i32, %arg1: i32) -> (i32, i32, i32) {
    %c0_i32 = arith.constant 0 : i32
    %c0_i32_0 = arith.constant 0 : i32
    %c0_i32_1 = arith.constant 0 : i32
    return %arg1, %c0_i32, %c0_i32_0 : i32, i32, i32
  }
  func.func @transform_5(%arg0: i32, %arg1: i32) -> (i32, i32, i32) {
    %c0_i32 = arith.constant 0 : i32
    %c0_i32_0 = arith.constant 0 : i32
    %c0_i32_1 = arith.constant 0 : i32
    return %arg1, %c0_i32, %c0_i32_0 : i32, i32, i32
  }
  func.func @transform_6(%arg0: i32, %arg1: i32) -> (i32, i32, i32) {
    %c0_i32 = arith.constant 0 : i32
    %c0_i32_0 = arith.constant 0 : i32
    %c0_i32_1 = arith.constant 0 : i32
    return %arg0, %c0_i32, %c0_i32_0 : i32, i32, i32
  }
}

</mosaic_0001>

<bundles_post_ra>
// kernel: tpu_custom_call.1
= control target key start
LH: loop header
LB: loop body
LE: loop exit
PB: predicated region body
PF: predicated region fallthrough
CT: control target
= control target key end

     0   :  { %11 = vsyncpa [#allocation4], 0  ;;  %s1448_s0 = inlined_call_operand.vmem [shape: f32[2,8,32], index: 0, kind: input, shape index: {}]   ;;  %s1449_s1 = inlined_call_operand.vmem [shape: f32[2,1,32], index: 1, kind: input, shape index: {}]   ;;  %s1450_s2 = inlined_call_operand.vmem [shape: f32[2,1,32], index: 2, kind: input, shape index: {}]   ;;  %s1451_s3 = inlined_call_operand.vmem [shape: f32[2,32,8], index: 3, kind: input, shape index: {}]   ;;  %s1452_s4 = inlined_call_operand.vmem [shape: f32[2,32,8], index: 4, kind: input, shape index: {}]   ;;  %s1453_s5 = inlined_call_operand.vmem [shape: f32[2,32,32], index: 5, kind: input, shape index: {}]   ;;  %s1454_s6 = inlined_call_operand.hbm [shape: f32[2,8,32], index: 6, kind: output, shape index: {}]  }
   0x1   :  { %13 = vsyncpa [#allocation4 + $0x1], 0  ;;  %s1243_s21 = smov 0   ;;  %s1245_s22 = smov 0  }
   0x2   :  { %s1247_s23 = smov 0   ;;  %s1249_s24 = smov 0  }
   0x3   :  { %s1251_s25 = smov 0   ;;  %s1253_s26 = smov 0  }
   0x4   :  { %s1255_s27 = smov 0   ;;  %s1257_s28 = smov 0  }
   0x5 LB: > { %1462 = sst [smem:[#allocation6_spill]] %s1174_s21  ;;  %s918_s29 = sadd.s32 4294967295, %s1202_s28   ;;  %s1202_s28 = sphi %s1257_s28, %s19_s28   ;;  %s1198_s27 = sphi %s1255_s27, %s1480_s27   ;;  %s1194_s26 = sphi %s1253_s26, %s1479_s26   ;;  %s1190_s25 = sphi %s1251_s25, %s1478_s25   ;;  %s1186_s24 = sphi %s1249_s24, %s1477_s24   ;;  %s1182_s23 = sphi %s1247_s23, %s1476_s23   ;;  %s1178_s22 = sphi %s1245_s22, %s1482_s22   ;;  %s1174_s21 = sphi %s1243_s21, %s1481_s21  }
   0x6   : > { %1463 = sst [smem:[#allocation7_spill]] %s1182_s23  ;;  %s919_s30 = sadd.s32 4294967294, %s1202_s28  }
   0x7   : > { %1464 = sst [smem:[#allocation8_spill]] %s1194_s26  ;;  %s28_s7 = sadd.s32 1, %s1194_s26 }
   0x8   : > { %1465 = sst [smem:[#allocation9_spill]] %s1198_s27  ;;  %p29_p0 = scmp.ge.s32.totalorder %s28_s7, 2 }
   0x9   : > { %s31_s8 = sadd.s32 1, %s1198_s27  ;;  %p204_p1 = scmp.ne.s32.totalorder %s1182_s23, %s1178_s22 }
   0xa   : > { %p205_p2 = scmp.eq.s32.totalorder %s918_s29, 3  ;;  %s1484_s7 = smov (%p29_p0, %s28_s7), 0 }
   0xb   : > { %1466 = sst [smem:[#allocation10_spill]] %s1484_s7  ;;  %s1486_s8 = smov (!%p29_p0, %s31_s8), %s1198_s27 }
   0xc   : > { %p1292_p3 = por %p205_p2, %p204_p1  ;;  %p210_p4 = scmp.ne.s32.totalorder %s1178_s22, %s1174_s21 }
   0xd   : > { %p33_p5 = scmp.ge.s32.totalorder %s1486_s8, 2  ;;  %p211_p6 = scmp.eq.s32.totalorder %s919_s30, 3 }
   0xe   : > { %p922_p7 = scmp.ge.s32.totalorder %s1202_s28, 1  ;;  %p272_p8 = scmp.lt.s32.totalorder %s1202_s28, 5 }
   0xf   : > { %s1488_s8 = smov (%p33_p5, %s1486_s8), 0  ;;  %p1302_p9 = por %p211_p6, %p210_p4 }
  0x10   : > { %1468 = sst [smem:[#allocation11_spill]] %s1488_s8  ;;  %p273_p10 = pnand %p922_p7, %p272_p8 }
  0x11   : > { %s1469_s10 = scalar_select %p1302_p9, 1, 0 }
  0x12   : > { %s191_s11 = ssub.s32 %s1198_s27, %s1488_s8  ;;  %s194_s12 = sadd.s32 1, %s1182_s23 }
  0x13   : > { %1470 = sst [smem:[#allocation12_spill]] %s1469_s10  ;;  %p192_p11 = scmp.eq.s32.totalorder %s191_s11, 0 }
  0x14   : > { %276 = sbr.rel (%p273_p10) target bundleno = 1342 (0x53e), region = 44  ;;  %s1456_s14 = sand.u32 (!%p273_p10), 1, %s1178_s22  }
  0x15   : > { %s1310_s13 = scalar_select %p192_p11, %s1182_s23, %s194_s12  }
  0x16   : > { %p322_p12 = scmp.lt.s32.totalorder (!%p273_p10), %s1190_s25, 1  ;;  %s1316_s15 = sshll.u32 (!%p273_p10), %s1456_s14, 3 }
  0x17   : > { %1471 = sst [smem:[#allocation13_spill]] %s1310_s13  ;;  %p326_p13 = scmp.lt.s32.totalorder (!%p273_p10), %s1186_s24, 1 }
  0x18   : > { %s321_s30 = scalar_lea.vmem (!%p273_p10), [#allocation3], %s1316_s15  ;;  %p931_p0 = scmp.ne.s32.totalorder (!%p273_p10), %s1186_s24, 0 }
  0x1b   : > { %s323_s16 = scalar_select %p322_p12, %s1190_s25, 1 }
  0x1c   : > { %s1321_s17 = scalar_select %p326_p13, %s1186_s24, 1 }
  0x1d   : > { %s924_s18 = sshll.u32 %s323_s16, 3  ;;  %350 = sbr.rel (%p931_p0) target bundleno = 36 (0x24), region = 48  ;;  %vm352_vm0 = vcmask (!%p931_p0), 261120  }
  0x1e   : > { %s325_s29 = scalar_lea.vmem %s1448_s0, %s924_s18  ;;  %s328_s12 = scalar_lea.vmem %s1449_s1, %s1321_s17 }
  0x1f   : > { %s331_s7 = scalar_lea.vmem %s1450_s2, %s1321_s17  ;;  %s945_s27 = sshll.u32 %s1321_s17, 5  ;;  %v351_v0 = vld [vmem:[%s325_s29] sm:$0xff] (!%p931_p0) }
  0x20   : > { %s336_s23 = scalar_lea.vmem %s1451_s3, %s945_s27  ;;  %s1341_s16 = scalar_lea.vmem %s1452_s4, %s945_s27  ;;  %353 = vst.msk [vmem:[#allocation2] sm:$0xff] (!%p931_p0), %vm352_vm0, %v351_v0 }
  0x21   : > { %s1346_s20 = scalar_lea.vmem %s1453_s5, %s945_s27 }
  0x24 PF: > { %vm357_vm1 = vcmask 261120   ;;  %v386_v8 = vld [vmem:[%s336_s23] sm:$0xff]  ;;  %v387_v9 = vld [vmem:[%s336_s23 + $0x8] sm:$0xff]  ;;  %v1204_v11 = vmov 0.0|0.0   ;;  %v388_v14 = vld [vmem:[%s336_s23 + $0x10] sm:$0xff]  ;;  %vm1205_vm2 = vmmov 0  }
  0x25   : > { %v463_v10 = vld [vmem:[%s1341_s16] sm:$0xff]  ;;  %1010 = vmatprep.subr.bf16.mxu0 %v1204_v11  ;;  %v1011_v12 = vpack.c.bf16 %v387_v9, %v386_v8  ;;  %1016 = vmatprep.subr.bf16.mxu1 %v1204_v11  ;;  %v464_v13 = vld [vmem:[%s1341_s16 + $0x8] sm:$0xff]  ;;  %v389_v15 = vld [vmem:[%s336_s23 + $0x18] sm:$0xff]  ;;  %v1206_v19 = vmov 0.0   ;;  %vm611_vm3 = vcmask 64512   ;;  %p940_p1 = scmp.ne.s32.totalorder %s1186_s24, 1 }
  0x26   : > { %v1017_v16 = vpack.c.bf16 %v464_v13, %v463_v10  ;;  %v465_v17 = vld [vmem:[%s1341_s16 + $0x10] sm:$0xff]  ;;  %v466_v18 = vld [vmem:[%s1341_s16 + $0x18] sm:$0xff]  ;;  %975 = vmatprep.mubr.msk.f32.mxu0 %vm1205_vm2, %v1206_v19  ;;  %986 = vmatprep.mubr.msk.f32.mxu1 %vm1205_vm2, %v1206_v19  ;;  %v1014_v20 = vpack.c.bf16 %v389_v15, %v388_v14  ;;  %v932_v26 = vld [vmem:[%s328_s12] ss:$0 sm:$0xff] }
  0x27   : > { %v1350_v1 = vld [vmem:[#allocation2] sm:$0xff]  ;;  %1012 = vmatpush3.bf16.msra.mxu0 %v1011_v12  ;;  %v1020_v21 = vpack.c.bf16 %v466_v18, %v465_v17  ;;  %v538_v29 = vld [vmem:[%s1346_s20 + $0x8] sm:$0xff]  ;;  %v539_v34 = vld [vmem:[%s1346_s20 + $0x10] sm:$0xff] }
  0x28   : > { %v358_v2 = vsel %vm357_vm1, %v1350_v1, 0.0  ;;  %1018 = vmatpush3.bf16.msra.mxu1 %v1017_v16  ;;  %1013 = vmatprep.subr.bf16.mxu0 %v1204_v11  ;;  %v537_v28 = vld [vmem:[%s1346_s20] sm:$0xff]  ;;  %v540_v35 = vld [vmem:[%s1346_s20 + $0x18] sm:$0xff] }
  0x29   : > { %359 = vadd.xlane.f32.xlu0 %v358_v2  ;;  %1019 = vmatprep.subr.bf16.mxu1 %v1204_v11  ;;  %v933_v30 = vld [vmem:[%s331_s7] ss:$0 sm:$0xff]  ;;  %v1023_v32 = vpack.c.bf16 %v538_v29, %v537_v28  ;;  %v1026_v36 = vpack.c.bf16 %v540_v35, %v539_v34 }
  0x2b   : > { %1015 = vmatpush3.bf16.msra.mxu0 %v1014_v20 }
  0x2c   : > { %1021 = vmatpush3.bf16.msra.mxu1 %v1020_v21  ;;  %1022 = vmatprep.subr.bf16.mxu0 %v1204_v11 }
  0x2d   : > { %1000 = vmatprep.subr.mxu1 %v1206_v19 }
  0xb6   : > { %v360_v3 = vpop.xlane.xlu0 %359 }
  0xb7   : > { %v362_v4 = vmul.f32 0.03125, %v360_v3 }
  0xb9   : > { %v363_v5 = vsub.f32 %v1350_v1, %v362_v4 }
  0xbb   : > { %v364_v6 = vmul.f32 %v363_v5, %v363_v5 }
  0xbd   : > { %v365_v7 = vsel %vm357_vm1, %v364_v6, 0.0 }
  0xbe   : > { %366 = vadd.xlane.f32.xlu0 %v365_v7 }
 0x14b   : > { %v367_v22 = vpop.xlane.xlu0 %366 }
 0x14c   : > { %v368_v23 = vmul.f32 0.03125, %v367_v22 }
 0x14e   : > { %v369_v24 = vadd.f32 1e-05, %v368_v23 }
 0x150   : > { %1102 = vrsqrt.f32 %v369_v24 }
 0x15a   : > { %v1103_v25 = vpop.eup %1102 }
 0x15b   : > { %v371_v27 = vmul.f32 %v1103_v25, %v363_v5 }
 0x15d   : > { %v378_v31 = vmul.f32 %v932_v26, %v371_v27 }
 0x15f   : > { %v385_v33 = vadd.f32 %v933_v30, %v378_v31 }
 0x161   : > { %976 = vmatmul.mubr.msk.f32.vlgmr.msra.gmra.mrb[0].mxu0 %vm357_vm1, %v385_v33  ;;  %987 = vmatmul.mubr.msk.f32.vlgmr.msra.gmra.mrb[0].mxu1 %vm357_vm1, %v385_v33 }
 0x162   : > { %1024 = vmatpush3.bf16.msra.mxu0 %v1023_v32  ;;  %997 = vmatprep.mubr.msk.f32.mxu0 %vm1205_vm2, %v1206_v19 }
 0x163   : > { %1025 = vmatprep.subr.bf16.mxu0 %v1204_v11  ;;  %1002 = vmatprep.mubr.msk.f32.mxu1 %vm1205_vm2, %v1206_v19 }
 0x166   : > { %1027 = vmatpush3.bf16.msra.mxu0 %v1026_v36 }
 0x169   : > { %998 = vmatmul.mubr.msk.f32.vlgmr.msra.gmra.mrb[2].mxu0 %vm357_vm1, %v385_v33 }
 0x234   : > { %v459_v37 = vpop.f32.mrb[0].mxu0  ;;  %v533_v38 = vpop.f32.mrb[0].mxu1 }
 0x235   : > { %v977_v39 = vpop.f32.mrb[1].mxu0  ;;  %v988_v40 = vpop.f32.mrb[1].mxu1  ;;  %1001 = vmatpush3.xpose.msk.msra.mxu1 %vm611_vm3, %v533_v38 }
 0x236   : > { %1005 = vmatprep.subr.mxu1 %v1206_v19 }
 0x238   : > { %1003 = vmatmul.mubr.msk.f32.vlgmr.msra.gmra.mrb[2].mxu1 %vm611_vm3, %v459_v37 }
 0x239   : > { %1007 = vmatprep.mubr.msk.f32.mxu1 %vm1205_vm2, %v1206_v19 }
 0x23c   : > { %v607_v41 = vpop.f32.mrb[2].mxu0 }
 0x23d   : > { %v999_v42 = vpop.f32.mrb[3].mxu0  ;;  %1006 = vmatpush3.msra.mxu1 %v607_v41 }
 0x30b   : > { %v684_v43 = vpop.f32.mrb[2].mxu1 }
 0x30c   : > { %v1004_v44 = vpop.f32.mrb[3].mxu1  ;;  %v688_v45 = vsel %vm611_vm3, %v684_v43, -inf }
 0x30d   : > { %689 = vmax.xlane.f32.xlu1 %v688_v45 }
 0x39a   : > { %v690_v46 = vpop.xlane.xlu1 %689 }
 0x39b   : > { %v691_v47 = vsub.f32 %v684_v43, %v690_v46 }
 0x39d   : > { %v692_v48 = vmul.f32 1.442695, %v691_v47 }
 0x39f   : > { %1104 = vpow2.f32 %v692_v48 }
 0x3a9   : > { %v1105_v49 = vpop.eup %1104 }
 0x3aa   : > { %v694_v50 = vsel %vm611_vm3, %v1105_v49, 0.0 }
 0x3ab   : > { %695 = vadd.xlane.f32.xlu1 %v694_v50 }
 0x438   : > { %v696_v51 = vpop.xlane.xlu1 %695 }
 0x439   : > { %1106 = vrcp.f32 %v696_v51 }
 0x443   : > { %v1107_v52 = vpop.eup %1106 }
 0x444   : > { %v698_v53 = vmul.f32 %v1107_v52, %v1105_v49 }
 0x446   : > { %1008 = vmatmul.mubr.msk.f32.vlgmr.msra.gmra.mrb[4].mxu1 %vm611_vm3, %v698_v53 }
 0x516   : > { %777 = sbr.rel (%p940_p1) target bundleno = 1317 (0x525), region = 52 }
 0x519   : > { %v768_v54 = vpop.f32.mrb[4].mxu1 }
 0x51a   : > { %v772_v55 = vadd.f32 %v768_v54, %v1350_v1  ;;  %v1009_v56 = vpop.f32.mrb[5].mxu1 }
 0x51c   : > { %773 = vst.msk [vmem:[#allocation2] sm:$0xff] %vm357_vm1, %v772_v55 }
 0x523   : > { %v778_v57 = vld [vmem:[#allocation2] sm:$0xff] }
 0x524   : > { %779 = vst.msk [vmem:[%s321_s30] sm:$0xff] %vm357_vm1, %v778_v57 }
 0x525 PF: > { %s942_s7 = sshll.u32 %s1190_s25, 7  ;;  %s794_s14 = sshll.u32 %s321_s30, 4  ;;  %s795_s14 = int_to_ptr.vmem [resolvable:$true] %s794_s14 }
 0x526   : > { %s1397_s13 = scalar_lea.hbm %s1454_s6, %s942_s7  ;;  %s1472_s24 = sand.u32 1, %s1178_s22  }
 0x527   : > { %s781_s17 = scalar_lea.sflag [#allocation4], %s1472_s24  ;;  %s1108_s29 = scalar_lea.vmem %s795_s14, 128 }
 0x528   : > { %p1109_p2 = scmp.ne.s32.totalorder %s795_s14, %s1108_s29  ;;  %s1207_s11 = smov [#allocation3]  }
 0x529   : > { %s1112_s12 = sshll.u32 %s1207_s11, 4  ;;  %s1113_s12 = int_to_ptr.vmem [resolvable:$false] %s1112_s12 }
 0x52a   : > { %p1110_p4 = pnand %p1109_p2, %p1292_p3  ;;  %s1114_s16 = scalar_lea.vmem %s1113_s12, 256 }
 0x52b   : > { %p1115_p6 = scmp.lt.s32.totalorder %s795_s14, %s1113_s12  ;;  %p1116_p7 = scmp.lt.s32.totalorder %s1114_s16, %s1108_s29 }
 0x52c   : > { %p1111_p5 = pneg %p1110_p4 }
 0x52d   : > { %p1117_p8 = por %p1116_p7, %p1115_p6 }
 0x52f   : > { %p1118_p10 = pnand %p1117_p8, %p1111_p5 }
 0x531   : > { %1121 = shalt.err (!%p1118_p10)
}
 0x532   : > { %s1122_s25 = scalar_lea.hbm %s1397_s13, 128  ;;  %s1126_s18 = scalar_lea.hbm %s1454_s6, 256 }
 0x533   : > { %p1123_p11 = scmp.ne.s32.totalorder %s1397_s13, %s1122_s25  ;;  %p1127_p0 = scmp.lt.u32.totalorder %s1397_s13, %s1454_s6 }
 0x534   : > { %p1128_p1 = scmp.lt.u32.totalorder %s1126_s18, %s1122_s25  ;;  %p1130_p4 = scmp.lt.u32.totalorder %s1122_s25, %s1397_s13 }
 0x535   : > { %p1124_p12 = pnand %p1123_p11, %p1292_p3 }
 0x536   : > { %p1129_p2 = por %p1128_p1, %p1127_p0 }
 0x537   : > { %p1125_p13 = pneg %p1124_p12 }
 0x538   : > { %p1131_p5 = por %p1130_p4, %p1129_p2 }
 0x53a   : > { %p1132_p6 = pnand %p1131_p5, %p1125_p13 }
 0x53c   : > { %1135 = shalt.err (!%p1132_p6)
}
 0x53d   : > { %1028 = dma.vmem_to_hbm [thread:$0]  (%p1292_p3), %s795_s14, 128, %s1397_s13, %s781_s17  }
 0x53e PF: > { %s1473_s21 = sld [smem:[#allocation6_spill]]  ;;  %p1034_p7 = scmp.ge.s32.totalorder %s1202_s28, 2 }
 0x540   : > { %p1031_p8 = pnand %p1034_p7, %p1302_p9 }
 0x544   : > { %s806_s26 = sand.u32 1, %s1473_s21  }
 0x545   : > { %s807_s27 = scalar_lea.sflag [#allocation4], %s806_s26 }
 0x546   : > { %1169 = dma.done.wait (!%p1031_p8), %s807_s27, 128  }
 0x547   : > { %1171 = vsyncadd (!%p1031_p8), %s807_s27, 4294967168  ;;  %s19_s28 = sadd.s32 1, %s1202_s28   ;;  %s1475_s7 = sld [smem:[#allocation7_spill]] }
 0x548   : > { %p16_p10 = scmp.ge.s32.totalorder %s19_s28, 6   ;;  %s1476_s23 = sld [smem:[#allocation13_spill]] }
 0x549   : > { %s1477_s24 = sld [smem:[#allocation8_spill]]  ;;  %s1478_s25 = sld [smem:[#allocation9_spill]] }
 0x54a   : > { %s1479_s26 = sld [smem:[#allocation10_spill]]  ;;  %s1480_s27 = sld [smem:[#allocation11_spill]] }
 0x54b   : > { %s1481_s21 = smov %s1178_s22  ;;  %18 = sbr.rel (!%p16_p10) target bundleno = 5 (0x5), region = 102 }
 0x54d   : > { %s1482_s22 = smov %s1475_s7 }
 0x552   :  { %812 = vsyncpa [#allocation4], 1 }
 0x553   :  { %814 = vsyncpa [#allocation4 + $0x1], 1 }

</bundles_post_ra>
